<compile_context>
chip_gen: v7x
topology: tpu7x:2x2x1
jax: 0.10.0
libtpu: 0.0.40
codegen_flags: <defaults>
</compile_context>

<pallas_src>
import functools

import jax
import jax.numpy as jnp
from jax import lax
from jax.experimental import pallas as pl
from jax.experimental.pallas import tpu as pltpu

_LANE = 128


def _round_up(a: int, b: int) -> int:
    return (a + b - 1) // b * b


def _film_conv_tile(xm_ref, xe_ref, ca_ref, cb_ref, w_ref, col0,
                    *, K, d, TL, EXT, pad, L):
    """FiLM-modulate + dilated conv for output columns [col0, col0 + TL).

    xm_ref: (1, C, TL)   main tile of the left-padded input
    xe_ref: (1, C, EXT)  right-neighbour halo block
    ca/cb : (1, C, 1)    FiLM scale / offset for this batch element
    w_ref : (K, C, C)    conv weight, one (out, in) matrix per dilated tap

    Returns (x_res, y):
      x_res (C, TL): modulated input aligned to the output columns (residual path),
      y     (C, TL): float32 conv(x_mod) WITHOUT bias.
    """
    xw = jnp.concatenate([xm_ref[0], xe_ref[0]], axis=1)     # (C, TL+EXT), 128-aligned seam
    W = TL + EXT

    # FiLM modulation.  Columns that are conv zero-padding (or L-alignment padding) must
    # stay exactly zero, so mask with the *global* padded-input column index.
    t = col0 + lax.broadcasted_iota(jnp.int32, (1, W), 1)
    valid = jnp.logical_and(t >= pad, t < pad + L)
    xmod = ca_ref[0] * xw + cb_ref[0]
    xmod = jnp.where(valid, xmod, jnp.zeros_like(xmod))      # (C, W), caller dtype

    # Dilated conv as K accumulating MXU matmuls on statically shifted views.
    y = jnp.dot(w_ref[0], xmod[:, 0:TL], preferred_element_type=jnp.float32)
    for k in range(1, K):
        y = y + jnp.dot(w_ref[k], xmod[:, k * d:k * d + TL],
                        preferred_element_type=jnp.float32)

    x_res = xmod[:, pad:pad + TL]                            # modulated x for the residual
    return x_res, y


def _conv_stats_kernel(xm_ref, xe_ref, ca_ref, cb_ref, w_ref,
                       sum_ref, sq_ref, *, K, d, TL, EXT, pad, L):
    """Pass 1: per-group partial per-channel sum / sum-of-squares of the conv output."""
    i = pl.program_id(1)
    l = pl.program_id(2)

    @pl.when(jnp.logical_and(i == 0, l == 0))
    def _init():
        sum_ref[...] = jnp.zeros_like(sum_ref)
        sq_ref[...] = jnp.zeros_like(sq_ref)

    _, y = _film_conv_tile(xm_ref, xe_ref, ca_ref, cb_ref, w_ref, l * TL,
                           K=K, d=d, TL=TL, EXT=EXT, pad=pad, L=L)

    # Only true sequence columns contribute to the batch statistics.
    j = l * TL + lax.broadcasted_iota(jnp.int32, (1, TL), 1)
    ym = jnp.where(j < L, y, jnp.zeros_like(y))
    sum_ref[0] += jnp.sum(ym, axis=1, keepdims=True)         # (C, 1)
    sq_ref[0] += jnp.sum(ym * ym, axis=1, keepdims=True)     # (C, 1)


def _conv_bn_apply_kernel(xm_ref, xe_ref, ca_ref, cb_ref, w_ref,
                          scale_ref, shift_ref, out_ref, *, K, d, TL, EXT, pad, L):
    """Pass 2: conv + folded BN affine + ReLU + residual, lane-dense output tile."""
    l = pl.program_id(1)
    x_res, y = _film_conv_tile(xm_ref, xe_ref, ca_ref, cb_ref, w_ref, l * TL,
                               K=K, d=d, TL=TL, EXT=EXT, pad=pad, L=L)
    y = y * scale_ref[...] + shift_ref[...]
    y = jnp.maximum(y, 0.0)
    out_ref[0] = (x_res.astype(jnp.float32) + y).astype(out_ref.dtype)


def residual_conv_layer(x_ncl, conv_w, conv_b, gamma, beta,
                        cond=None, cond_w=None, cond_bias=None,
                        *, dilation, eps=1e-5):
    """x_ncl: (N, C, L) like PyTorch.  Returns (N, C, L)."""
    N, C, L = x_ncl.shape
    K = conv_w.shape[-1]
    d = int(dilation)
    pad = (K - 1) // 2 * d
    dt = x_ncl.dtype

    # ---------------------------------------------------------------- tiling choices
    EXT = _round_up(max(2 * pad, 1), _LANE)          # halo block, covers (K-1)*d spillover
    tl_cap = 512                                     # ~512 lanes is the measured sweet spot
    while tl_cap > EXT and tl_cap * C * dt.itemsize > (4 << 20):
        tl_cap //= 2                                 # shrink for very wide C (VMEM budget)
    tl_cap = max(EXT, (tl_cap // EXT) * EXT)         # multiple of EXT (hence of 128)
    TL = max(EXT, min(tl_cap, _round_up(L, EXT)))
    n_l = pl.cdiv(L, TL)
    Lp_out = n_l * TL                                # lane-dense padded output length
    Lp_x = Lp_out + EXT                              # room for the last halo block
    ext_stride = TL // EXT

    # Left-pad by the conv padding, right-pad to the tiled length (+ one halo block);
    # done once in the wrapper so every kernel block is a plain rectangular DMA.
    x_pad = jnp.pad(x_ncl, ((0, 0), (0, 0), (pad, Lp_x - L - pad)))

    # -------------------------------------------------------------- FiLM conditioning
    # TODO(synk): the 1x1 cond conv acts on a length-1 sequence (a tiny dense layer); it is
    # left to XLA and only its per-(batch, channel) scale/offset enter the kernels.
    if cond is not None:
        z = jax.nn.relu(cond @ cond_w[:, :, 0].T + cond_bias)        # (N, 2C)
        cond_b_term = z[:, :C].reshape(N, C, 1).astype(dt)
        cond_a_term = z[:, C:].reshape(N, C, 1).astype(dt)
    else:
        cond_a_term = jnp.ones((N, C, 1), dt)
        cond_b_term = jnp.zeros((N, C, 1), dt)

    # conv weight (O, I, K) -> (K, O, I): one (C, C) matrix per dilated tap (caller dtype).
    w_taps = jnp.transpose(conv_w, (2, 0, 1))

    kcommon = dict(K=K, d=d, TL=TL, EXT=EXT, pad=pad, L=L)
    cparams = dict(vmem_limit_bytes=32 * 1024 * 1024)

    # ---------- pass 1: per-group partial (sum, sumsq) of the biasless conv output ----------
    G = 2 if (N % 2 == 0 and N > 1) else 1           # per-core partial stats (v7x megacore)
    npg = N // G

    x_spec1 = pl.BlockSpec((1, C, TL), lambda g, i, l: (g * npg + i, 0, l))
    xe_spec1 = pl.BlockSpec((1, C, EXT),
                            lambda g, i, l: (g * npg + i, 0, (l + 1) * ext_stride))
    cvec_spec1 = pl.BlockSpec((1, C, 1), lambda g, i, l: (g * npg + i, 0, 0))
    w_spec1 = pl.BlockSpec((K, C, C), lambda g, i, l: (0, 0, 0))
    stat_spec1 = pl.BlockSpec((1, C, 1), lambda g, i, l: (g, 0, 0))

    psum, psq = pl.pallas_call(
        functools.partial(_conv_stats_kernel, **kcommon),
        out_shape=(jax.ShapeDtypeStruct((G, C, 1), jnp.float32),
                   jax.ShapeDtypeStruct((G, C, 1), jnp.float32)),
        grid=(G, npg, n_l),
        in_specs=[x_spec1, xe_spec1, cvec_spec1, cvec_spec1, w_spec1],
        out_specs=(stat_spec1, stat_spec1),
        compiler_params=pltpu.CompilerParams(
            dimension_semantics=("parallel", "arbitrary", "arbitrary"), **cparams),
    )(x_pad, x_pad, cond_a_term, cond_b_term, w_taps)

    # Fold batch stats + BN affine into one per-channel scale/shift (tiny JAX math).
    # The Conv1d bias shifts both the activations and the batch mean, so it cancels
    # exactly under training-mode BatchNorm and never needs to enter the kernels.
    cnt = jnp.float32(N * L)
    mean = jnp.sum(psum, axis=0)[:, 0] / cnt                 # (C,)  E[conv]
    ex2 = jnp.sum(psq, axis=0)[:, 0] / cnt                   # (C,)  E[conv^2]
    var = jnp.maximum(ex2 - mean * mean, 0.0)
    # TODO(synk): for very large N*L use shifted/Welford accumulation; the single-pass
    # E[y^2]-E[y]^2 form can lose precision for large-mean activations.
    rstd = lax.rsqrt(var + eps)
    g32 = gamma.astype(jnp.float32)
    bn_scale = (g32 * rstd).reshape(C, 1)
    bn_shift = (beta.astype(jnp.float32) - g32 * rstd * mean).reshape(C, 1)

    # ---------- pass 2: conv + folded BN affine + ReLU + residual ----------
    x_spec2 = pl.BlockSpec((1, C, TL), lambda n, l: (n, 0, l))
    xe_spec2 = pl.BlockSpec((1, C, EXT), lambda n, l: (n, 0, (l + 1) * ext_stride))
    cvec_spec2 = pl.BlockSpec((1, C, 1), lambda n, l: (n, 0, 0))
    w_spec2 = pl.BlockSpec((K, C, C), lambda n, l: (0, 0, 0))
    col_spec2 = pl.BlockSpec((C, 1), lambda n, l: (0, 0))

    out_p = pl.pallas_call(
        functools.partial(_conv_bn_apply_kernel, **kcommon),
        out_shape=jax.ShapeDtypeStruct((N, C, Lp_out), dt),
        grid=(N, n_l),
        in_specs=[x_spec2, xe_spec2, cvec_spec2, cvec_spec2, w_spec2,
                  col_spec2, col_spec2],
        out_specs=x_spec2,
        compiler_params=pltpu.CompilerParams(
            dimension_semantics=("parallel", "parallel"), **cparams),
    )(x_pad, x_pad, cond_a_term, cond_b_term, w_taps, bn_scale, bn_shift)

    return out_p[:, :, :L]


def reference_forward(x_ncl, conv_w, conv_b, gamma, beta,
                      cond=None, cond_w=None, cond_bias=None,
                      *, dilation, eps=1e-5):
    """Pure-JAX reference matching the PyTorch forward (training-mode BatchNorm)."""
    N, C, L = x_ncl.shape
    K = conv_w.shape[-1]
    pad = (K - 1) // 2 * dilation
    if cond is not None:
        z = jax.nn.relu(cond @ cond_w[:, :, 0].T + cond_bias)
        cond_b_term = z[:, :C][:, :, None]
        cond_a_term = z[:, C:][:, :, None]
        x_ncl = cond_a_term * x_ncl + cond_b_term
    out = lax.conv_general_dilated(
        x_ncl, conv_w, window_strides=(1,), padding=[(pad, pad)],
        rhs_dilation=(dilation,), dimension_numbers=('NCH', 'OIH', 'NCH'),
    ) + conv_b[None, :, None]
    mean = out.mean(axis=(0, 2), keepdims=True)
    var = ((out - mean) ** 2).mean(axis=(0, 2), keepdims=True)
    normed = (out - mean) / jnp.sqrt(var + eps)
    normed = normed * gamma[None, :, None] + beta[None, :, None]
    return x_ncl + jax.nn.relu(normed)


if __name__ == "__main__":
    # Small shapes consistent with the module: x is (batch, channels, length).
    N, C, L = 2, 8, 16
    K, dilation = 3, 2
    cond_channel = 6

    key = jax.random.PRNGKey(0)
    k1, k2, k3, k4, k5, k6, k7, k8 = jax.random.split(key, 8)

    x = jax.random.normal(k1, (N, C, L), jnp.float32)
    cond = jax.random.normal(k2, (N, cond_channel), jnp.float32)

    # Deterministic synthetic parameters (shapes from the module's __init__).
    conv_w = jax.random.normal(k3, (C, C, K), jnp.float32) * 0.2        # Conv1d weight (O, I, K)
    conv_b = jax.random.normal(k4, (C,), jnp.float32) * 0.1             # Conv1d bias
    gamma = 1.0 + 0.1 * jax.random.normal(k5, (C,), jnp.float32)        # BatchNorm weight
    beta = 0.1 * jax.random.normal(k6, (C,), jnp.float32)               # BatchNorm bias
    cond_w = jax.random.normal(k7, (2 * C, cond_channel, 1), jnp.float32) * 0.2  # 1x1 conv weight
    cond_bias = jax.random.normal(k8, (2 * C,), jnp.float32) * 0.1

    out = residual_conv_layer(x, conv_w, conv_b, gamma, beta,
                              cond=cond, cond_w=cond_w, cond_bias=cond_bias,
                              dilation=dilation)
    out = jax.block_until_ready(out)

    ref = reference_forward(x, conv_w, conv_b, gamma, beta,
                            cond=cond, cond_w=cond_w, cond_bias=cond_bias,
                            dilation=dilation)
    assert out.shape == (N, C, L)
    assert jnp.allclose(out, ref, rtol=1e-4, atol=1e-4), \
        f"max abs err {jnp.max(jnp.abs(out - ref))}"

    # Also exercise the cond=None path.
    out_nocond = jax.block_until_ready(
        residual_conv_layer(x, conv_w, conv_b, gamma, beta, dilation=dilation))
    ref_nocond = reference_forward(x, conv_w, conv_b, gamma, beta, dilation=dilation)
    assert jnp.allclose(out_nocond, ref_nocond, rtol=1e-4, atol=1e-4), \
        f"max abs err {jnp.max(jnp.abs(out_nocond - ref_nocond))}"

    print("KERNEL_OK")
</pallas_src>

<mosaic_0001>
module attributes {stable_mosaic.version = 11 : i64} {
  func.func @_conv_stats_kernel(%arg0: i32, %arg1: i32, %arg2: i32, %arg3: memref<1x8x128xf32, #tpu.memory_space<vmem>>, %arg4: memref<1x8x128xf32, #tpu.memory_space<vmem>>, %arg5: memref<1x8x1xf32, #tpu.memory_space<vmem>>, %arg6: memref<1x8x1xf32, #tpu.memory_space<vmem>>, %arg7: memref<3x8x8xf32, #tpu.memory_space<vmem>>, %arg8: memref<1x8x1xf32, #tpu.memory_space<vmem>>, %arg9: memref<1x8x1xf32, #tpu.memory_space<vmem>>) attributes {dimension_semantics = [#tpu.dimension_semantics<parallel>, #tpu.dimension_semantics<arbitrary>, #tpu.dimension_semantics<arbitrary>], iteration_bounds = array<i64: 2, 1, 1>, scalar_prefetch = 0 : i64, scratch_operands = 0 : i64, tpu.core_type = #tpu.core_type<tc>, window_params = [{transform_indices = @transform_0, window_bounds = array<i64: 1, 8, 128>}, {transform_indices = @transform_1, window_bounds = array<i64: 1, 8, 128>}, {transform_indices = @transform_2, window_bounds = array<i64: 1, 8, 1>}, {transform_indices = @transform_3, window_bounds = array<i64: 1, 8, 1>}, {pipeline_mode = #tpu.pipeline_mode<synchronous>, transform_indices = @transform_4, window_bounds = array<i64: 3, 8, 8>}, {transform_indices = @transform_5, window_bounds = array<i64: 1, 8, 1>}, {transform_indices = @transform_6, window_bounds = array<i64: 1, 8, 1>}]} {
    %c0_i32 = arith.constant 0 : i32
    %0 = arith.cmpi eq, %arg1, %c0_i32 : i32
    %c0_i32_0 = arith.constant 0 : i32
    %1 = arith.cmpi eq, %arg2, %c0_i32_0 : i32
    %2 = arith.andi %0, %1 : i1
    %3 = arith.extui %2 : i1 to i32
    %c0_i32_1 = arith.constant 0 : i32
    %4 = arith.cmpi ne, %3, %c0_i32_1 : i32
    scf.if %4 {
      %cst_39 = arith.constant 0.000000e+00 : f32
      %72 = vector.broadcast %cst_39 : f32 to vector<1x8x1xf32>
      %c0_40 = arith.constant 0 : index
      %c0_41 = arith.constant 0 : index
      %c0_42 = arith.constant 0 : index
      %73 = vector.load %arg8[%c0_40, %c0_41, %c0_42] : memref<1x8x1xf32, #tpu.memory_space<vmem>>, vector<1x8x1xf32>
      tpu.vector_store %arg8[%c0_40, %c0_41, %c0_42], %72 {strides = array<i32>} : memref<1x8x1xf32, #tpu.memory_space<vmem>>, vector<1x8x1xf32>,
      %cst_43 = arith.constant 0.000000e+00 : f32
      %74 = vector.broadcast %cst_43 : f32 to vector<1x8x1xf32>
      %c0_44 = arith.constant 0 : index
      %c0_45 = arith.constant 0 : index
      %c0_46 = arith.constant 0 : index
      %75 = vector.load %arg9[%c0_44, %c0_45, %c0_46] : memref<1x8x1xf32, #tpu.memory_space<vmem>>, vector<1x8x1xf32>
      tpu.vector_store %arg9[%c0_44, %c0_45, %c0_46], %74 {strides = array<i32>} : memref<1x8x1xf32, #tpu.memory_space<vmem>>, vector<1x8x1xf32>,
    } else {
    }
    %c128_i32 = arith.constant 128 : i32
    %5 = arith.muli %arg2, %c128_i32 : i32
    %c0 = arith.constant 0 : index
    %c0_2 = arith.constant 0 : index
    %c0_3 = arith.constant 0 : index
    %6 = vector.load %arg3[%c0, %c0_2, %c0_3] : memref<1x8x128xf32, #tpu.memory_space<vmem>>, vector<1x8x128xf32>
    %7 = vector.shape_cast %6 : vector<1x8x128xf32> to vector<8x128xf32>
    %c0_4 = arith.constant 0 : index
    %c0_5 = arith.constant 0 : index
    %c0_6 = arith.constant 0 : index
    %8 = vector.load %arg4[%c0_4, %c0_5, %c0_6] : memref<1x8x128xf32, #tpu.memory_space<vmem>>, vector<1x8x128xf32>
    %9 = vector.shape_cast %8 : vector<1x8x128xf32> to vector<8x128xf32>
    %10 = tpu.concatenate %7, %9 in 1 : vector<8x128xf32>, vector<8x128xf32> -> vector<8x256xf32>
    %11 = tpu.iota {dimensions = array<i32: 1>} : vector<1x256xi32>
    %12 = vector.broadcast %5 : i32 to vector<1x256xi32>
    %13 = arith.addi %12, %11 : vector<1x256xi32>
    %c2_i32 = arith.constant 2 : i32
    %14 = vector.broadcast %c2_i32 : i32 to vector<1x256xi32>
    %15 = arith.cmpi sge, %13, %14 : vector<1x256xi32>
    %c18_i32 = arith.constant 18 : i32
    %16 = vector.broadcast %c18_i32 : i32 to vector<1x256xi32>
    %17 = arith.cmpi slt, %13, %16 : vector<1x256xi32>
    %18 = arith.andi %15, %17 : vector<1x256xi1>
    %c0_7 = arith.constant 0 : index
    %c0_8 = arith.constant 0 : index
    %c0_9 = arith.constant 0 : index
    %19 = vector.load %arg5[%c0_7, %c0_8, %c0_9] : memref<1x8x1xf32, #tpu.memory_space<vmem>>, vector<1x8x1xf32>
    %20 = vector.shape_cast %19 : vector<1x8x1xf32> to vector<8x1xf32>
    %21 = vector.broadcast %20 : vector<8x1xf32> to vector<8x256xf32>
    %22 = arith.mulf %21, %10 : vector<8x256xf32>
    %c0_10 = arith.constant 0 : index
    %c0_11 = arith.constant 0 : index
    %c0_12 = arith.constant 0 : index
    %23 = vector.load %arg6[%c0_10, %c0_11, %c0_12] : memref<1x8x1xf32, #tpu.memory_space<vmem>>, vector<1x8x1xf32>
    %24 = vector.shape_cast %23 : vector<1x8x1xf32> to vector<8x1xf32>
    %25 = vector.broadcast %24 : vector<8x1xf32> to vector<8x256xf32>
    %26 = arith.addf %22, %25 : vector<8x256xf32>
    %cst = arith.constant 0.000000e+00 : f32
    %27 = vector.broadcast %cst : f32 to vector<8x256xf32>
    %28 = vector.shape_cast %18 : vector<1x256xi1> to vector<1x256xi1>
    %29 = vector.broadcast %28 : vector<1x256xi1> to vector<8x256xi1>
    %30 = arith.select %29, %26, %27 : vector<8x256xi1>, vector<8x256xf32>
    %c0_13 = arith.constant 0 : index
    %c0_14 = arith.constant 0 : index
    %c0_15 = arith.constant 0 : index
    %31 = vector.load %arg7[%c0_13, %c0_14, %c0_15] : memref<3x8x8xf32, #tpu.memory_space<vmem>>, vector<1x8x8xf32>
    %32 = vector.shape_cast %31 : vector<1x8x8xf32> to vector<8x8xf32>
    %33 = vector.extract_strided_slice %30 {offsets = [0, 0], sizes = [8, 128], strides = [1, 1]} : vector<8x256xf32> to vector<8x128xf32>
    %cst_16 = arith.constant dense<0.000000e+00> : vector<8x128xf32>
    %34 = tpu.matmul %32, %33, %cst_16 {dimension_numbers = #tpu.dot_dimension_numbers<[1], [0], [0], [1], [0, 0, 1, 1], [], []>} : vector<8x8xf32>, vector<8x128xf32>, vector<8x128xf32> -> vector<8x128xf32>
    %c1 = arith.constant 1 : index
    %c0_17 = arith.constant 0 : index
    %c0_18 = arith.constant 0 : index
    %35 = vector.load %arg7[%c1, %c0_17, %c0_18] : memref<3x8x8xf32, #tpu.memory_space<vmem>>, vector<1x8x8xf32>
    %36 = vector.shape_cast %35 : vector<1x8x8xf32> to vector<8x8xf32>
    %37 = vector.extract_strided_slice %30 {offsets = [0, 2], sizes = [8, 128], strides = [1, 1]} : vector<8x256xf32> to vector<8x128xf32>
    %cst_19 = arith.constant dense<0.000000e+00> : vector<8x128xf32>
    %38 = tpu.matmul %36, %37, %cst_19 {dimension_numbers = #tpu.dot_dimension_numbers<[1], [0], [0], [1], [0, 0, 1, 1], [], []>} : vector<8x8xf32>, vector<8x128xf32>, vector<8x128xf32> -> vector<8x128xf32>
    %39 = arith.addf %34, %38 : vector<8x128xf32>
    %c2 = arith.constant 2 : index
    %c0_20 = arith.constant 0 : index
    %c0_21 = arith.constant 0 : index
    %40 = vector.load %arg7[%c2, %c0_20, %c0_21] : memref<3x8x8xf32, #tpu.memory_space<vmem>>, vector<1x8x8xf32>
    %41 = vector.shape_cast %40 : vector<1x8x8xf32> to vector<8x8xf32>
    %42 = vector.extract_strided_slice %30 {offsets = [0, 4], sizes = [8, 128], strides = [1, 1]} : vector<8x256xf32> to vector<8x128xf32>
    %cst_22 = arith.constant dense<0.000000e+00> : vector<8x128xf32>
    %43 = tpu.matmul %41, %42, %cst_22 {dimension_numbers = #tpu.dot_dimension_numbers<[1], [0], [0], [1], [0, 0, 1, 1], [], []>} : vector<8x8xf32>, vector<8x128xf32>, vector<8x128xf32> -> vector<8x128xf32>
    %44 = arith.addf %39, %43 : vector<8x128xf32>
    %c128_i32_23 = arith.constant 128 : i32
    %45 = arith.muli %arg2, %c128_i32_23 : i32
    %46 = tpu.iota {dimensions = array<i32: 1>} : vector<1x128xi32>
    %47 = vector.broadcast %45 : i32 to vector<1x128xi32>
    %48 = arith.addi %47, %46 : vector<1x128xi32>
    %c16_i32 = arith.constant 16 : i32
    %49 = vector.broadcast %c16_i32 : i32 to vector<1x128xi32>
    %50 = arith.cmpi slt, %48, %49 : vector<1x128xi32>
    %cst_24 = arith.constant 0.000000e+00 : f32
    %51 = vector.broadcast %cst_24 : f32 to vector<8x128xf32>
    %52 = vector.shape_cast %50 : vector<1x128xi1> to vector<1x128xi1>
    %53 = vector.broadcast %52 : vector<1x128xi1> to vector<8x128xi1>
    %54 = arith.select %53, %44, %51 : vector<8x128xi1>, vector<8x128xf32>
    %c0_25 = arith.constant 0 : index
    %c0_26 = arith.constant 0 : index
    %c0_27 = arith.constant 0 : index
    %55 = vector.load %arg8[%c0_25, %c0_26, %c0_27] : memref<1x8x1xf32, #tpu.memory_space<vmem>>, vector<1x8x1xf32>
    %56 = vector.shape_cast %55 : vector<1x8x1xf32> to vector<8x1xf32>
    %cst_28 = arith.constant dense<0.000000e+00> : vector<8xf32>
    %57 = vector.multi_reduction <add>, %54, %cst_28 [1] : vector<8x128xf32> to vector<8xf32>
    %58 = vector.shape_cast %57 : vector<8xf32> to vector<8x1xf32>
    %59 = arith.addf %56, %58 : vector<8x1xf32>
    %c0_29 = arith.constant 0 : index
    %c0_30 = arith.constant 0 : index
    %c0_31 = arith.constant 0 : index
    %60 = vector.load %arg8[%c0_29, %c0_30, %c0_31] : memref<1x8x1xf32, #tpu.memory_space<vmem>>, vector<1x8x1xf32>
    %61 = vector.shape_cast %60 : vector<1x8x1xf32> to vector<8x1xf32>
    %62 = vector.shape_cast %59 : vector<8x1xf32> to vector<1x8x1xf32>
    tpu.vector_store %arg8[%c0_29, %c0_30, %c0_31], %62 {strides = array<i32>} : memref<1x8x1xf32, #tpu.memory_space<vmem>>, vector<1x8x1xf32>,
    %c0_32 = arith.constant 0 : index
    %c0_33 = arith.constant 0 : index
    %c0_34 = arith.constant 0 : index
    %63 = vector.load %arg9[%c0_32, %c0_33, %c0_34] : memref<1x8x1xf32, #tpu.memory_space<vmem>>, vector<1x8x1xf32>
    %64 = vector.shape_cast %63 : vector<1x8x1xf32> to vector<8x1xf32>
    %65 = arith.mulf %54, %54 : vector<8x128xf32>
    %cst_35 = arith.constant dense<0.000000e+00> : vector<8xf32>
    %66 = vector.multi_reduction <add>, %65, %cst_35 [1] : vector<8x128xf32> to vector<8xf32>
    %67 = vector.shape_cast %66 : vector<8xf32> to vector<8x1xf32>
    %68 = arith.addf %64, %67 : vector<8x1xf32>
    %c0_36 = arith.constant 0 : index
    %c0_37 = arith.constant 0 : index
    %c0_38 = arith.constant 0 : index
    %69 = vector.load %arg9[%c0_36, %c0_37, %c0_38] : memref<1x8x1xf32, #tpu.memory_space<vmem>>, vector<1x8x1xf32>
    %70 = vector.shape_cast %69 : vector<1x8x1xf32> to vector<8x1xf32>
    %71 = vector.shape_cast %68 : vector<8x1xf32> to vector<1x8x1xf32>
    tpu.vector_store %arg9[%c0_36, %c0_37, %c0_38], %71 {strides = array<i32>} : memref<1x8x1xf32, #tpu.memory_space<vmem>>, vector<1x8x1xf32>,
    return
  }
  func.func @transform_0(%arg0: i32, %arg1: i32, %arg2: i32) -> (i32, i32, i32) {
    %c1_i32 = arith.constant 1 : i32
    %0 = arith.muli %arg0, %c1_i32 : i32
    %1 = arith.addi %0, %arg1 : i32
    %c0_i32 = arith.constant 0 : i32
    %c0_i32_0 = arith.constant 0 : i32
    return %1, %c0_i32, %arg2 : i32, i32, i32
  }
  func.func @transform_1(%arg0: i32, %arg1: i32, %arg2: i32) -> (i32, i32, i32) {
    %c1_i32 = arith.constant 1 : i32
    %0 = arith.muli %arg0, %c1_i32 : i32
    %1 = arith.addi %0, %arg1 : i32
    %c1_i32_0 = arith.constant 1 : i32
    %2 = arith.addi %arg2, %c1_i32_0 : i32
    %c1_i32_1 = arith.constant 1 : i32
    %3 = arith.muli %2, %c1_i32_1 : i32
    %c0_i32 = arith.constant 0 : i32
    %c0_i32_2 = arith.constant 0 : i32
    return %1, %c0_i32, %3 : i32, i32, i32
  }
  func.func @transform_2(%arg0: i32, %arg1: i32, %arg2: i32) -> (i32, i32, i32) {
    %c1_i32 = arith.constant 1 : i32
    %0 = arith.muli %arg0, %c1_i32 : i32
    %1 = arith.addi %0, %arg1 : i32
    %c0_i32 = arith.constant 0 : i32
    %c0_i32_0 = arith.constant 0 : i32
    %c0_i32_1 = arith.constant 0 : i32
    return %1, %c0_i32, %c0_i32_0 : i32, i32, i32
  }
  func.func @transform_3(%arg0: i32, %arg1: i32, %arg2: i32) -> (i32, i32, i32) {
    %c1_i32 = arith.constant 1 : i32
    %0 = arith.muli %arg0, %c1_i32 : i32
    %1 = arith.addi %0, %arg1 : i32
    %c0_i32 = arith.constant 0 : i32
    %c0_i32_0 = arith.constant 0 : i32
    %c0_i32_1 = arith.constant 0 : i32
    return %1, %c0_i32, %c0_i32_0 : i32, i32, i32
  }
  func.func @transform_4(%arg0: i32, %arg1: i32, %arg2: i32) -> (i32, i32, i32) {
    %c0_i32 = arith.constant 0 : i32
    %c0_i32_0 = arith.constant 0 : i32
    %c0_i32_1 = arith.constant 0 : i32
    %c0_i32_2 = arith.constant 0 : i32
    return %c0_i32, %c0_i32_0, %c0_i32_1 : i32, i32, i32
  }
  func.func @transform_5(%arg0: i32, %arg1: i32, %arg2: i32) -> (i32, i32, i32) {
    %c0_i32 = arith.constant 0 : i32
    %c0_i32_0 = arith.constant 0 : i32
    %c0_i32_1 = arith.constant 0 : i32
    return %arg0, %c0_i32, %c0_i32_0 : i32, i32, i32
  }
  func.func @transform_6(%arg0: i32, %arg1: i32, %arg2: i32) -> (i32, i32, i32) {
    %c0_i32 = arith.constant 0 : i32
    %c0_i32_0 = arith.constant 0 : i32
    %c0_i32_1 = arith.constant 0 : i32
    return %arg0, %c0_i32, %c0_i32_0 : i32, i32, i32
  }
}

</mosaic_0001>

<bundles_post_ra>
// kernel: tpu_custom_call.1
= control target key start
LH: loop header
LB: loop body
LE: loop exit
PB: predicated region body
PF: predicated region fallthrough
CT: control target
= control target key end

     0   :  { %12 = vsyncpa [#allocation3], 0  ;;  %s1347_s0 = inlined_call_operand.vmem [shape: f32[2,8,256], index: 0, kind: input, shape index: {}]   ;;  %s1348_s1 = inlined_call_operand.hbm [shape: f32[2,8,256], index: 1, kind: input, shape index: {}]   ;;  %s1349_s2 = inlined_call_operand.vmem [shape: f32[2,8,1], index: 2, kind: input, shape index: {}]   ;;  %s1350_s3 = inlined_call_operand.vmem [shape: f32[2,8,1], index: 3, kind: input, shape index: {}]   ;;  %s1351_s4 = inlined_call_operand.hbm [shape: f32[3,8,8], index: 4, kind: input, shape index: {}]   ;;  %s1352_s5 = inlined_call_operand.vmem [shape: f32[2,8,1], index: 5, kind: output, shape index: {0}]   ;;  %s1353_s6 = inlined_call_operand.vmem [shape: f32[2,8,1], index: 6, kind: output, shape index: {1}]  }
   0x1   :  { %14 = vsyncpa [#allocation3 + $0x1], 0 }
   0x2   :  { %15 = vsyncpa [#allocation5], 0  ;;  %s1159_s21 = smov 0   ;;  %s1161_s22 = smov 0  }
   0x3   :  { %s1163_s23 = smov 0   ;;  %s1165_s24 = smov 0  }
   0x4   :  { %s1167_s25 = smov 0   ;;  %s1169_s26 = smov 0  }
   0x5 LB: > { %s877_s27 = sadd.s32 4294967295, %s1113_s26   ;;  %p96_p0 = scmp.ne.s32.totalorder %s1097_s22, %s1093_s21  ;;  %s1113_s26 = sphi %s1169_s26, %s21_s26   ;;  %s1109_s25 = sphi %s1167_s25, %s1371_s25   ;;  %s1105_s24 = sphi %s1165_s24, %s1370_s24   ;;  %s1101_s23 = sphi %s1163_s23, %s1369_s23   ;;  %s1097_s22 = sphi %s1161_s22, %s1368_s22   ;;  %s1093_s21 = sphi %s1159_s21, %s1367_s21  }
   0x6   : > { %p1189_p1 = scmp.eq.s32.totalorder %s877_s27, 0  ;;  %p879_p2 = scmp.ge.s32.totalorder %s1113_s26, 1 }
   0x7   : > { %p236_p3 = scmp.lt.s32.totalorder %s1113_s26, 3  ;;  %s1115_s7 = smov [#allocation4]  }
   0x8   : > { %s1358_s28 = scalar_select %p1189_p1, 1, 0 }
   0x9   : > { %p1197_p4 = por %p1189_p1, %p96_p0  ;;  %p1201_p5 = pnand %p879_p2, %p236_p3 }
   0xa   : > { %s248_s8 = sshll.u32 %s1115_s7, 4  ;;  %s40_s10 = sadd.s32 1, %s1109_s25  ;;  %s249_s8 = int_to_ptr.vmem [resolvable:$true] %s248_s8 }
   0xb   : > { %s1359_s29 = scalar_select %p1197_p4, 1, 0 }
   0xc   : > { %s1360_s30 = scalar_select %p1201_p5, 1, 0 }
   0xd   : > { %p932_p6 = pneg %p1201_p5  ;;  %s1000_s13 = scalar_lea.hbm %s1351_s4, 384 }
   0xe   : > { %p1001_p8 = scmp.ne.s32.totalorder %s1351_s4, %s1000_s13  ;;  %p1007_p12 = scmp.lt.u32.totalorder %s1000_s13, %s1351_s4 }
   0xf   : > { %p1209_p7 = pnand %p932_p6, %p1189_p1 }
  0x11   : > { %p1002_p9 = pneg %p1209_p7 }
  0x13   : > { %p1003_p10 = pnand %p1002_p9, %p1001_p8 }
  0x15   : > { %p1004_p11 = pneg %p1003_p10 }
  0x17   : > { %p1009_p13 = pnand %p1007_p12, %p1004_p11 }
  0x19   : > { %1012 = shalt.err (!%p1009_p13)
}
  0x1a   : > { %s1013_s18 = scalar_lea.vmem %s249_s8, 384  ;;  %p1021_p6 = scmp.lt.s32.totalorder %s249_s8, %s249_s8 }
  0x1b   : > { %p1014_p0 = scmp.ne.s32.totalorder %s249_s8, %s1013_s18  ;;  %p1022_p1 = scmp.lt.s32.totalorder %s1013_s18, %s1013_s18 }
  0x1d   : > { %p1016_p2 = pnand %p1014_p0, %p1002_p9  ;;  %p1023_p4 = por %p1022_p1, %p1021_p6 }
  0x1f   : > { %p1017_p3 = pneg %p1016_p2 }
  0x21   : > { %p1024_p5 = pnand %p1023_p4, %p1017_p3 }
  0x23   : > { %1027 = shalt.err (!%p1024_p5)
}
  0x24   : > { %s1116_s19 = smov 128   ;;  %s1117_s20 = smov 8  }
  0x25   : > { %935 = dma.hbm_to_vmem [thread:$0]  (!%p1209_p7), %s1351_s4, 384, %s249_s8, [#allocation5], %s1116_s19, %s1116_s19, %s1117_s20  }
  0x26   : > { %p42_p1 = scmp.ge.s32.totalorder %s40_s10, 2  ;;  %s83_s7 = sadd.s32 1, %s1101_s23 }
  0x27   : > { %p90_p4 = scmp.ne.s32.totalorder %s1101_s23, %s1097_s22  ;;  %p91_p5 = scmp.eq.s32.totalorder %s1113_s26, 0 }
  0x28   : > { %s1373_s10 = smov (%p42_p1, %s40_s10), 0  ;;  %p941_p9 = scmp.lt.s32.totalorder %s1113_s26, 2 }
  0x29   : > { %p1236_p8 = por %p91_p5, %p90_p4  ;;  %s78_s12 = ssub.s32 %s1109_s25, %s1373_s10 }
  0x2a   : > { %s275_s13 = sand.u32 1, %s1101_s23   ;;  %p81_p10 = scmp.eq.s32.totalorder %s78_s12, 0 }
  0x2b   : > { %s882_s9 = sshll.u32 %s275_s13, 3  ;;  %s900_s14 = sshll.u32 %s1109_s25, 8 }
  0x2c   : > { %s1246_s15 = scalar_select %p81_p10, %s1101_s23, %s83_s7  }
  0x2d   : > { %s762_s17 = scalar_lea.hbm %s1348_s1, %s900_s14  ;;  %s279_s19 = scalar_lea.vmem [#allocation2], %s882_s9 }
  0x2e   : > { %s1251_s18 = scalar_lea.hbm %s762_s17, 128  ;;  %s290_s20 = sshll.u32 %s279_s19, 4  ;;  %s1253_s20 = int_to_ptr.vmem [resolvable:$true] %s290_s20 }
  0x2f   : > { %p1257_p7 = pnand %p941_p9, %p1236_p8  ;;  %s276_s27 = scalar_lea.sflag [#allocation3], %s275_s13 }
  0x30   : > { %s1058_s7 = scalar_lea.hbm %s762_s17, 256  ;;  %s1033_s14 = scalar_lea.hbm %s1348_s1, 512 }
  0x31   : > { %p1029_p11 = scmp.ne.s32.totalorder %s1251_s18, %s1058_s7  ;;  %p1030_p12 = pneg %p1257_p7 }
  0x32   : > { %p1034_p2 = scmp.lt.u32.totalorder %s1251_s18, %s1348_s1  ;;  %p1035_p3 = scmp.lt.u32.totalorder %s1033_s14, %s1058_s7 }
  0x33   : > { %p1031_p13 = pnand %p1030_p12, %p1029_p11  ;;  %p1037_p1 = scmp.lt.u32.totalorder %s1058_s7, %s1251_s18 }
  0x34   : > { %p1036_p6 = por %p1035_p3, %p1034_p2 }
  0x35   : > { %p1032_p0 = pneg %p1031_p13 }
  0x36   : > { %p1038_p4 = por %p1037_p1, %p1036_p6 }
  0x38   : > { %p1039_p5 = pnand %p1038_p4, %p1032_p0 }
  0x3a   : > { %1042 = shalt.err (!%p1039_p5)
}
  0x3b   : > { %s1043_s13 = scalar_lea.vmem %s1253_s20, 128  ;;  %s1118_s16 = smov [#allocation2]  }
  0x3c   : > { %p1044_p8 = scmp.ne.s32.totalorder %s1253_s20, %s1043_s13  ;;  %s1048_s17 = sshll.u32 %s1118_s16, 4  ;;  %s1049_s17 = int_to_ptr.vmem [resolvable:$false] %s1048_s17 }
  0x3d   : > { %s1050_s19 = scalar_lea.vmem %s1049_s17, 256  ;;  %p1051_p11 = scmp.lt.s32.totalorder %s1253_s20, %s1049_s17 }
  0x3e   : > { %p1046_p9 = pnand %p1044_p8, %p1030_p12  ;;  %p1052_p13 = scmp.lt.s32.totalorder %s1050_s19, %s1043_s13 }
  0x40   : > { %p1047_p10 = pneg %p1046_p9  ;;  %p1053_p2 = por %p1052_p13, %p1051_p11 }
  0x42   : > { %p1054_p3 = pnand %p1053_p2, %p1047_p10 }
  0x44   : > { %1057 = shalt.err (!%p1054_p3)
}
  0x45   : > { %939 = dma.hbm_to_vmem [thread:$0]  (!%p1257_p7), %s1251_s18, 128, %s1253_s20, %s276_s27  }
  0x46   : > { %p1364_p0 = scmp.ne.s32.totalorder %s1360_s30, 0 }
  0x47   : > { %s319_s7 = sand.u32 (!%p1364_p0), 1, %s1097_s22   ;;  %p1365_p12 = scmp.ne.s32.totalorder (!%p1364_p0), %s1359_s29, 0 }
  0x48   : > { %317 = sbr.rel (%p1364_p0) target bundleno = 707 (0x2c3), region = 40  ;;  %s320_s12 = scalar_lea.sflag (!%p1364_p0), [#allocation3], %s319_s7 }
  0x4f   : > { %1084 = dma.done.wait (%p1365_p12), %s320_s12, 128  }
  0x50   : > { %1086 = vsyncadd (%p1365_p12), %s320_s12, 4294967168  ;;  %p1366_p6 = scmp.ne.s32.totalorder %s1358_s28, 0 }
  0x52   : > { %1088 = dma.done.wait (%p1366_p6), [#allocation5], 384  }
  0x53   : > { %1090 = vsyncadd (%p1366_p6), [#allocation5], 4294966912  ;;  %p379_p7 = scmp.lt.s32.totalorder %s1105_s24, 1  ;;  %v1119_v0 = vmov 0   ;;  %v1120_v3 = vmov 0.0   ;;  %s1121_s28 = smov 126   ;;  %v422_v4 = vlaneseq }
  0x54   : > { %999 = vset.pattern.permute.xlu0 %v1119_v0  ;;  %463 = vrot.lane.b32.xlu1 %v1120_v3, %s1121_s28  ;;  %vm1122_vm0 = vmmov 0   ;;  %v456_v11 = vld [vmem:[#allocation4] sm:$0xff]  ;;  %vm468_vm4 = vcmask 64512   ;;  %s1123_s16 = smov 124   ;;  %vm465_vm5 = vcmask 1031168   ;;  %v458_v15 = vld [vmem:[#allocation4 + $0x8] sm:$0xff] }
  0x55   : > { %s1375_s24 = smov (!%p379_p7, %s1105_s24), 1  ;;  %913 = vmatprep.subr.mxu0 %v1120_v3  ;;  %908 = vmatprep.subr.mxu1 %v1120_v3  ;;  %v423_v5 = vand.u32 127, %v422_v4  ;;  %vm621_vm6 = vcmask 1014784   ;;  %v616_v19 = vld [vmem:[#allocation4 + $0x10] sm:$0xff]  ;;  %vm416_vm7 = vcmask 7168  }
  0x56   : > { %s1298_s30 = sshll.u32 %s1375_s24, 3  ;;  %915 = vmatprep.mubr.msk.f32.mxu0 %vm1122_vm0, %v1120_v3  ;;  %910 = vmatprep.mubr.msk.f32.mxu1 %vm1122_vm0, %v1120_v3  ;;  %s901_s14 = sshll.u32 %s1375_s24, 4 }
  0x57   : > { %s394_s29 = scalar_lea.vmem %s1349_s2, %s1298_s30  ;;  %s400_s9 = scalar_lea.vmem %s1350_s3, %s1298_s30  ;;  %vm428_vm1 = vcmp.ge.s32.totalorder %v423_v5, 2  ;;  %vm430_vm2 = vcmp.lt.s32.totalorder %v423_v5, 18  ;;  %vm698_vm8 = vcmp.lt.s32.totalorder %v423_v5, 16 }
  0x58   : > { %v434_v1 = vld [vmem:[%s394_s29] sm:$0xff]  ;;  %s386_s13 = scalar_lea.vmem %s1347_s0, %s901_s14  ;;  %vm432_vm3 = vmand %vm428_vm1, %vm430_vm2  ;;  %s405_s19 = scalar_lea.vmem %s1352_s5, %s1298_s30 }
  0x59   : > { %437 = vperm.xlu0 %999, %v434_v1   ;;  %v442_v2 = vld [vmem:[%s400_s9] sm:$0xff]  ;;  %417 = vst.msk [vmem:[%s405_s19] sm:$0xff] %vm416_vm7, %v1120_v3  ;;  %s409_s18 = scalar_lea.vmem %s1353_s6, %s1298_s30 }
  0x5a   : > { %v420_v7 = vld [vmem:[%s386_s13] sm:$0xff]  ;;  %418 = vst.msk [vmem:[%s409_s18] sm:$0xff] %vm416_vm7, %v1120_v3 }
  0x5d   : > { %445 = vperm.xlu0 %999, %v442_v2  }
  0x60   : > { %v702_v28 = vld [vmem:[%s405_s19] sm:$0xff] }
  0x61   : > { %v708_v30 = vld [vmem:[%s409_s18] sm:$0xff] }
  0xc6   : > { %v464_v13 = vpop.permute.xlu1 %463 }
  0xd8   : > { %v438_v6 = vpop.permute.xlu0 %437 }
  0xd9   : > { %v440_v8 = vmul.f32 %v438_v6, %v420_v7 }
  0xdc   : > { %v446_v9 = vpop.permute.xlu0 %445 }
  0xdd   : > { %v448_v10 = vadd.f32 %v446_v9, %v440_v8 }
  0xdf   : > { %914 = vmatpush3.msk.msra.mxu0 %vm432_vm3, %v448_v10  ;;  %v454_v12 = vsel %vm432_vm3, %v448_v10, 0.0 }
  0xe0   : > { %617 = vrot.lane.b32.xlu0 %v454_v12, %s1123_s16  ;;  %461 = vrot.lane.b32.xlu1 %v454_v12, %s1121_s28 }
  0xe1   : > { %916 = vmatmul.mubr.msk.f32.vlgmr.msra.gmra.mrb[0].mxu0 %vm468_vm4, %v456_v11  ;;  %918 = vmatprep.subr.mxu0 %v1120_v3 }
  0xe2   : > { %920 = vmatprep.mubr.msk.f32.mxu0 %vm1122_vm0, %v1120_v3 }
  0xe4   : > { %619 = vrot.lane.b32.xlu1 %v1120_v3, %s1123_s16 }
 0x152   : > { %v462_v14 = vpop.permute.xlu1 %461  ;;  %v618_v17 = vpop.permute.xlu0 %617 }
 0x153   : > { %v466_v16 = vsel %vm465_vm5, %v462_v14, %v464_v13 }
 0x154   : > { %909 = vmatpush3.msra.mxu1 %v466_v16 }
 0x155   : > { %911 = vmatmul.mubr.msk.f32.vlgmr.msra.gmra.mrb[0].mxu1 %vm468_vm4, %v458_v15 }
 0x156   : > { %v620_v18 = vpop.permute.xlu1 %619 }
 0x157   : > { %v622_v20 = vsel %vm621_vm6, %v618_v17, %v620_v18 }
 0x158   : > { %919 = vmatpush3.msra.mxu0 %v622_v20 }
 0x159   : > { %921 = vmatmul.mubr.msk.f32.vlgmr.msra.gmra.mrb[0].mxu0 %vm468_vm4, %v616_v19 }
 0x228   : > { %v538_v21 = vpop.f32.mrb[0].mxu1 }
 0x229   : > { %v912_v22 = vpop.f32.mrb[1].mxu1 }
 0x22c   : > { %v693_v23 = vpop.f32.mrb[0].mxu0 }
 0x22d   : > { %v923_v24 = vadd.f32 %v693_v23, %v538_v21  ;;  %v922_v25 = vpop.f32.mrb[1].mxu0 }
 0x22f   : > { %v701_v26 = vsel %vm698_vm8, %v923_v24, 0.0 }
 0x230   : > { %703 = vadd.xlane.f32.xlu0 %v701_v26  ;;  %v709_v27 = vmul.f32 %v701_v26, %v701_v26 }
 0x232   : > { %710 = vadd.xlane.f32.xlu1 %v709_v27 }
 0x2bd   : > { %v704_v29 = vpop.xlane.xlu0 %703 }
 0x2be   : > { %v705_v31 = vadd.f32 %v704_v29, %v702_v28 }
 0x2bf   : > { %v711_v32 = vpop.xlane.xlu1 %710 }
 0x2c0   : > { %707 = vst.msk [vmem:[%s405_s19] sm:$0xff] %vm416_vm7, %v705_v31  ;;  %v712_v33 = vadd.f32 %v711_v32, %v708_v30 }
 0x2c2   : > { %713 = vst.msk [vmem:[%s409_s18] sm:$0xff] %vm416_vm7, %v712_v33 }
 0x2c3 PF: > { %s21_s26 = sadd.s32 1, %s1113_s26   ;;  %s1367_s21 = smov %s1097_s22 }
 0x2c4   : > { %p18_p1 = scmp.ge.s32.totalorder %s21_s26, 4   ;;  %s1368_s22 = smov %s1101_s23 }
 0x2c5   : > { %s1369_s23 = smov %s1246_s15  ;;  %s1370_s24 = smov %s1109_s25 }
 0x2c6   : > { %s1371_s25 = smov %s1373_s10  ;;  %20 = sbr.rel (!%p18_p1) target bundleno = 5 (0x5), region = 111 }
 0x2cd   :  { %747 = vsyncpa [#allocation3], 1 }
 0x2ce   :  { %749 = vsyncpa [#allocation3 + $0x1], 1 }
 0x2cf   :  { %750 = vsyncpa [#allocation5], 1 }

</bundles_post_ra>
